<compile_context>
chip_gen: v7x
topology: tpu7x:2x2x1
jax: 0.10.0
libtpu: 0.0.40
codegen_flags: <defaults>
</compile_context>

<pallas_src>
import jax
import jax.numpy as jnp
import numpy as np
from jax.experimental import pallas as pl
from jax.experimental.pallas import tpu as pltpu

HIDDEN = 128  # hypernet hidden width (matches nn.Linear(stateDim, 128))


def _round_up(x: int, m: int) -> int:
    return ((x + m - 1) // m) * m


def make_mixing_kernel(num_agents: int, num_actions: int, state_dim: int):
    """Build the fused kernel for static (numAgents=N, actions=K, stateDim=S)."""
    N, K, S = num_agents, num_actions, state_dim

    def kernel(x_ref, w1_ref, b1_ref, w2_ref, b2_ref, sel_ref, out_ref):
        x = x_ref[...]                                            # (TB, S + N*N*K)

        # Fused hypernet first layers: rows of w1_cat beyond the state lanes are
        # zero, so contracting the whole fused input is free on the MXU and
        # avoids slicing out the state part.
        h = jnp.dot(x, w1_ref[...], preferred_element_type=jnp.float32) + b1_ref[...]
        h = jnp.maximum(h, 0.0)                                   # (TB, 2H)

        # Fused second layers; column layout: [bmix | zeros | w1 tiled K times].
        wb = jnp.abs(jnp.dot(h, w2_ref[...],
                             preferred_element_type=jnp.float32) + b2_ref[...])

        # bmm epilogue on the MXU: element-wise product (VPU, lane-aligned by
        # construction), then one constant 0/1 selector matmul that sums over j.
        p = wb * x                                                # lanes S.. = w1[i,j]*q[j,k]
        r = jnp.dot(p, sel_ref[...],
                    preferred_element_type=jnp.float32)           # (TB, N*K), k-major

        # max over the action dim: K-1 element-wise maxes of N-lane slices.
        m = r[:, 0:N]
        for k in range(1, K):
            m = jnp.maximum(m, r[:, k * N:(k + 1) * N])

        # + state-dependent mixing bias (lanes 0..N-1 of wb).
        out_ref[...] = m + wb[:, 0:N]                             # (TB, N)

    return kernel


def init_mixing_params(key, num_agents: int, state_dim_per_agent: int, hidden: int = HIDDEN):
    """Deterministic synthetic init matching MixingNetwork's parameter shapes."""
    S = num_agents * state_dim_per_agent
    keys = jax.random.split(key, 8)

    def lin(kw, kb, fan_in, fan_out):
        bound = 1.0 / jnp.sqrt(jnp.float32(fan_in))
        w = jax.random.uniform(kw, (fan_in, fan_out), jnp.float32, -bound, bound)
        b = jax.random.uniform(kb, (1, fan_out), jnp.float32, -bound, bound)
        return w, b

    w1a, b1a = lin(keys[0], keys[1], S, hidden)                          # hyperW1 layer 1
    w1b, b1b = lin(keys[2], keys[3], hidden, num_agents * num_agents)    # hyperW1 layer 2
    w2a, b2a = lin(keys[4], keys[5], S, hidden)                          # hyperW2 layer 1
    w2b, b2b = lin(keys[6], keys[7], hidden, num_agents)                 # hyperW2 layer 2
    return dict(w1a=w1a, b1a=b1a, w1b=w1b, b1b=b1b,
                w2a=w2a, b2a=b2a, w2b=w2b, b2b=b2b)


def _fuse_params(params, num_agents: int, num_actions: int, state_dim: int, hidden: int):
    """Fuse hypernet params + build the constant selector (plain JAX/numpy, once)."""
    N, K, S, H = num_agents, num_actions, state_dim, hidden
    W = S + N * N * K                                     # fused lane width of x / wb

    # Layer 1: (W, 2H); only the first S (state) rows are non-zero.
    w1_cat = jnp.zeros((W, 2 * H), jnp.float32)
    w1_cat = w1_cat.at[:S, :H].set(params["w1a"])
    w1_cat = w1_cat.at[:S, H:].set(params["w2a"])
    b1_cat = jnp.concatenate([params["b1a"], params["b2a"]], axis=1)     # (1, 2H)

    # Layer 2: (2H, W); columns = [bmix (N) | zeros | w1 tiled K times (N*N*K)].
    w1b_tiled = jnp.tile(params["w1b"], (1, K))                          # (H, K*N*N)
    b1b_tiled = jnp.tile(params["b1b"], (1, K))                          # (1, K*N*N)
    w2_cat = jnp.zeros((2 * H, W), jnp.float32)
    w2_cat = w2_cat.at[H:, :N].set(params["w2b"])
    w2_cat = w2_cat.at[:H, S:].set(w1b_tiled)
    b2_cat = jnp.zeros((1, W), jnp.float32)
    b2_cat = b2_cat.at[:, :N].set(params["b2b"])
    b2_cat = b2_cat.at[:, S:].set(b1b_tiled)

    # Constant 0/1 selector: lane (S + k*N*N + i*N + j)  ->  column (k*N + i).
    sel = np.zeros((W, N * K), np.float32)
    for k in range(K):
        for i in range(N):
            for j in range(N):
                sel[S + k * N * N + i * N + j, k * N + i] = 1.0
    return w1_cat, b1_cat, w2_cat, b2_cat, jnp.asarray(sel)


def mixing_network_forward(q_values, state, params, num_agents: int,
                           state_dim_per_agent: int, tile_batch: int = 4096):
    """Pallas-backed MixingNetwork.forward(qValues, state)."""
    assert q_values.ndim == 3, "Unexpected qValues shape"
    B, N, K = q_values.shape
    assert N == num_agents
    S = num_agents * state_dim_per_agent
    assert S >= N, "fused layout requires stateDim*numAgents >= numAgents"
    H = params["w1a"].shape[1]
    W = S + N * N * K

    state_flat = state.reshape(-1, S).astype(jnp.float32)                # state.view(-1, stateDim)
    # q replica layout: lane S + k*N*N + i*N + j  holds q[b, j, k]  (i is a free
    # copy index), so the in-kernel element-wise product needs no lane shuffles.
    q_t = jnp.transpose(q_values.astype(jnp.float32), (0, 2, 1))         # (B, K, N) = [b, k, j]
    q_rep = jnp.broadcast_to(q_t[:, :, None, :], (B, K, N, N)).reshape(B, K * N * N)
    x = jnp.concatenate([state_flat, q_rep], axis=1)                     # (B, W): single stream

    w1_cat, b1_cat, w2_cat, b2_cat, sel = _fuse_params(params, N, K, S, H)

    # Batch tiling: cap at tile_batch, but keep >= 2 grid steps when B allows it
    # so the "parallel" batch axis splits across both TensorCores on v7x.
    TB = max(8, min(tile_batch, _round_up(pl.cdiv(B, 2), 8)))
    B_pad = _round_up(B, TB)
    if B_pad != B:
        x = jnp.pad(x, ((0, B_pad - B), (0, 0)))                         # padded rows discarded below

    kernel = make_mixing_kernel(N, K, S)
    grid = (B_pad // TB,)

    out = pl.pallas_call(
        kernel,
        out_shape=jax.ShapeDtypeStruct((B_pad, N), jnp.float32),
        grid=grid,
        in_specs=[
            pl.BlockSpec((TB, W), lambda i: (i, 0)),           # fused state|q stream
            pl.BlockSpec(w1_cat.shape, lambda i: (0, 0)),      # weights stay resident
            pl.BlockSpec(b1_cat.shape, lambda i: (0, 0)),
            pl.BlockSpec(w2_cat.shape, lambda i: (0, 0)),
            pl.BlockSpec(b2_cat.shape, lambda i: (0, 0)),
            pl.BlockSpec(sel.shape, lambda i: (0, 0)),         # constant selector
        ],
        out_specs=pl.BlockSpec((TB, N), lambda i: (i, 0)),
        compiler_params=pltpu.CompilerParams(
            dimension_semantics=("parallel",),                 # megacore split on v7x
            vmem_limit_bytes=48 * 1024 * 1024,                 # < v7x 64 MiB/TC physical
        ),
    )(x, w1_cat, b1_cat, w2_cat, b2_cat, sel)

    return out[:B]


def mixing_network_reference(q_values, state, params, num_agents: int, state_dim_per_agent: int):
    """Pure-JAX reference mirroring the PyTorch forward exactly (unfused params)."""
    B, N, K = q_values.shape
    S = num_agents * state_dim_per_agent
    s = state.reshape(-1, S)
    h1 = jnp.maximum(s @ params["w1a"] + params["b1a"], 0.0)
    w1 = jnp.abs(h1 @ params["w1b"] + params["b1b"]).reshape(B, N, N)
    h2 = jnp.maximum(s @ params["w2a"] + params["b2a"], 0.0)
    b1 = jnp.abs(h2 @ params["w2b"] + params["b2b"]).reshape(B, N)
    prod = jnp.einsum("bij,bjk->bik", w1, q_values)                      # torch.bmm
    if K == 1:
        return prod[..., 0] + b1                                         # squeeze(2) + b1
    return jnp.max(prod, axis=2) + b1                                    # max(dim=2)[0] + b1


if __name__ == "__main__":
    num_agents = 4           # N
    state_dim_per_agent = 3  # per-agent state dim -> total stateDim = 12

    key = jax.random.PRNGKey(0)
    k_params, k_state, k_q1, k_q2, k_state3, k_q3 = jax.random.split(key, 6)

    params = init_mixing_params(k_params, num_agents, state_dim_per_agent)

    # Case 1: qValues of shape (B, N, 1)  -> bmm(...).squeeze(2) + b1
    batch = 2
    state = jax.random.normal(k_state, (batch, num_agents, state_dim_per_agent), jnp.float32)
    q1 = jax.random.normal(k_q1, (batch, num_agents, 1), jnp.float32)
    out1 = jax.block_until_ready(
        mixing_network_forward(q1, state, params, num_agents, state_dim_per_agent))
    ref1 = mixing_network_reference(q1, state, params, num_agents, state_dim_per_agent)

    # Case 2: qValues of shape (B, N, K>1) -> bmm(...).max(dim=2)[0] + b1
    q2 = jax.random.normal(k_q2, (batch, num_agents, 5), jnp.float32)
    out2 = jax.block_until_ready(
        mixing_network_forward(q2, state, params, num_agents, state_dim_per_agent))
    ref2 = mixing_network_reference(q2, state, params, num_agents, state_dim_per_agent)

    # Case 3: multi-tile grid with tail padding (batch not a multiple of tile).
    batch3 = 20
    state3 = jax.random.normal(k_state3, (batch3, num_agents, state_dim_per_agent), jnp.float32)
    q3 = jax.random.normal(k_q3, (batch3, num_agents, 5), jnp.float32)
    out3 = jax.block_until_ready(
        mixing_network_forward(q3, state3, params, num_agents, state_dim_per_agent,
                               tile_batch=8))
    ref3 = mixing_network_reference(q3, state3, params, num_agents, state_dim_per_agent)

    assert out1.shape == (batch, num_agents)
    assert out2.shape == (batch, num_agents)
    assert out3.shape == (batch3, num_agents)
    assert jnp.allclose(out1, ref1, rtol=1e-2, atol=1e-2), (out1, ref1)
    assert jnp.allclose(out2, ref2, rtol=1e-2, atol=1e-2), (out2, ref2)
    assert jnp.allclose(out3, ref3, rtol=1e-2, atol=1e-2), (out3, ref3)

    print("KERNEL_OK")
</pallas_src>

<mosaic_0001>
module attributes {stable_mosaic.version = 11 : i64} {
  func.func @kernel(%arg0: i32, %arg1: memref<8x28xf32, #tpu.memory_space<vmem>>, %arg2: memref<28x256xf32, #tpu.memory_space<vmem>>, %arg3: memref<1x256xf32, #tpu.memory_space<vmem>>, %arg4: memref<256x28xf32, #tpu.memory_space<vmem>>, %arg5: memref<1x28xf32, #tpu.memory_space<vmem>>, %arg6: memref<28x4xf32, #tpu.memory_space<vmem>>, %arg7: memref<8x4xf32, #tpu.memory_space<vmem>>) attributes {dimension_semantics = [#tpu.dimension_semantics<parallel>], iteration_bounds = array<i64: 1>, scalar_prefetch = 0 : i64, scratch_operands = 0 : i64, tpu.core_type = #tpu.core_type<tc>, window_params = [{transform_indices = @transform_0, window_bounds = array<i64: 8, 28>}, {pipeline_mode = #tpu.pipeline_mode<synchronous>, transform_indices = @transform_1, window_bounds = array<i64: 28, 256>}, {pipeline_mode = #tpu.pipeline_mode<synchronous>, transform_indices = @transform_2, window_bounds = array<i64: 1, 256>}, {pipeline_mode = #tpu.pipeline_mode<synchronous>, transform_indices = @transform_3, window_bounds = array<i64: 256, 28>}, {pipeline_mode = #tpu.pipeline_mode<synchronous>, transform_indices = @transform_4, window_bounds = array<i64: 1, 28>}, {pipeline_mode = #tpu.pipeline_mode<synchronous>, transform_indices = @transform_5, window_bounds = array<i64: 28, 4>}, {transform_indices = @transform_6, window_bounds = array<i64: 8, 4>}]} {
    %c0 = arith.constant 0 : index
    %c0_0 = arith.constant 0 : index
    %0 = vector.load %arg1[%c0, %c0_0] : memref<8x28xf32, #tpu.memory_space<vmem>>, vector<8x28xf32>
    %c0_1 = arith.constant 0 : index
    %c0_2 = arith.constant 0 : index
    %1 = vector.load %arg2[%c0_1, %c0_2] : memref<28x256xf32, #tpu.memory_space<vmem>>, vector<28x256xf32>
    %cst = arith.constant dense<0.000000e+00> : vector<8x256xf32>
    %2 = tpu.matmul %0, %1, %cst {dimension_numbers = #tpu.dot_dimension_numbers<[1], [0], [0], [1], [0, 0, 1, 1], [], []>} : vector<8x28xf32>, vector<28x256xf32>, vector<8x256xf32> -> vector<8x256xf32>
    %c0_3 = arith.constant 0 : index
    %c0_4 = arith.constant 0 : index
    %3 = vector.load %arg3[%c0_3, %c0_4] : memref<1x256xf32, #tpu.memory_space<vmem>>, vector<1x256xf32>
    %4 = vector.broadcast %3 : vector<1x256xf32> to vector<8x256xf32>
    %5 = arith.addf %2, %4 : vector<8x256xf32>
    %cst_5 = arith.constant 0.000000e+00 : f32
    %6 = vector.broadcast %cst_5 : f32 to vector<8x256xf32>
    %7 = arith.maximumf %5, %6 : vector<8x256xf32>
    %c0_6 = arith.constant 0 : index
    %c0_7 = arith.constant 0 : index
    %8 = vector.load %arg4[%c0_6, %c0_7] : memref<256x28xf32, #tpu.memory_space<vmem>>, vector<256x28xf32>
    %cst_8 = arith.constant dense<0.000000e+00> : vector<8x28xf32>
    %9 = tpu.matmul %7, %8, %cst_8 {dimension_numbers = #tpu.dot_dimension_numbers<[1], [0], [0], [1], [0, 0, 1, 1], [], []>} : vector<8x256xf32>, vector<256x28xf32>, vector<8x28xf32> -> vector<8x28xf32>
    %c0_9 = arith.constant 0 : index
    %c0_10 = arith.constant 0 : index
    %10 = vector.load %arg5[%c0_9, %c0_10] : memref<1x28xf32, #tpu.memory_space<vmem>>, vector<1x28xf32>
    %11 = vector.broadcast %10 : vector<1x28xf32> to vector<8x28xf32>
    %12 = arith.addf %9, %11 : vector<8x28xf32>
    %13 = math.absf %12 : vector<8x28xf32>
    %14 = arith.mulf %13, %0 : vector<8x28xf32>
    %c0_11 = arith.constant 0 : index
    %c0_12 = arith.constant 0 : index
    %15 = vector.load %arg6[%c0_11, %c0_12] : memref<28x4xf32, #tpu.memory_space<vmem>>, vector<28x4xf32>
    %cst_13 = arith.constant dense<0.000000e+00> : vector<8x4xf32>
    %16 = tpu.matmul %14, %15, %cst_13 {dimension_numbers = #tpu.dot_dimension_numbers<[1], [0], [0], [1], [0, 0, 1, 1], [], []>} : vector<8x28xf32>, vector<28x4xf32>, vector<8x4xf32> -> vector<8x4xf32>
    %17 = vector.extract_strided_slice %13 {offsets = [0, 0], sizes = [8, 4], strides = [1, 1]} : vector<8x28xf32> to vector<8x4xf32>
    %18 = arith.addf %16, %17 : vector<8x4xf32>
    %c0_14 = arith.constant 0 : index
    %c0_15 = arith.constant 0 : index
    %19 = vector.load %arg7[%c0_14, %c0_15] : memref<8x4xf32, #tpu.memory_space<vmem>>, vector<8x4xf32>
    tpu.vector_store %arg7[%c0_14, %c0_15], %18 {strides = array<i32>} : memref<8x4xf32, #tpu.memory_space<vmem>>, vector<8x4xf32>,
    return
  }
  func.func @transform_0(%arg0: i32) -> (i32, i32) {
    %c0_i32 = arith.constant 0 : i32
    %c0_i32_0 = arith.constant 0 : i32
    return %arg0, %c0_i32 : i32, i32
  }
  func.func @transform_1(%arg0: i32) -> (i32, i32) {
    %c0_i32 = arith.constant 0 : i32
    %c0_i32_0 = arith.constant 0 : i32
    %c0_i32_1 = arith.constant 0 : i32
    return %c0_i32, %c0_i32_0 : i32, i32
  }
  func.func @transform_2(%arg0: i32) -> (i32, i32) {
    %c0_i32 = arith.constant 0 : i32
    %c0_i32_0 = arith.constant 0 : i32
    %c0_i32_1 = arith.constant 0 : i32
    return %c0_i32, %c0_i32_0 : i32, i32
  }
  func.func @transform_3(%arg0: i32) -> (i32, i32) {
    %c0_i32 = arith.constant 0 : i32
    %c0_i32_0 = arith.constant 0 : i32
    %c0_i32_1 = arith.constant 0 : i32
    return %c0_i32, %c0_i32_0 : i32, i32
  }
  func.func @transform_4(%arg0: i32) -> (i32, i32) {
    %c0_i32 = arith.constant 0 : i32
    %c0_i32_0 = arith.constant 0 : i32
    %c0_i32_1 = arith.constant 0 : i32
    return %c0_i32, %c0_i32_0 : i32, i32
  }
  func.func @transform_5(%arg0: i32) -> (i32, i32) {
    %c0_i32 = arith.constant 0 : i32
    %c0_i32_0 = arith.constant 0 : i32
    %c0_i32_1 = arith.constant 0 : i32
    return %c0_i32, %c0_i32_0 : i32, i32
  }
  func.func @transform_6(%arg0: i32) -> (i32, i32) {
    %c0_i32 = arith.constant 0 : i32
    %c0_i32_0 = arith.constant 0 : i32
    return %arg0, %c0_i32 : i32, i32
  }
}

</mosaic_0001>

<bundles_post_ra>
// kernel: tpu_custom_call.1
= control target key start
LH: loop header
LB: loop body
LE: loop exit
PB: predicated region body
PF: predicated region fallthrough
CT: control target
= control target key end

     0   :  { %vm48_vm0 = vcmask 1043456   ;;  %v435_v3 = vmov 0.0   ;;  %vm436_vm1 = vmmov 1   ;;  %vm44_vm3 = vcmask 228352   ;;  %s636_s1 = inlined_call_operand.vmem [shape: f32[28,256], index: 1, kind: input, shape index: {}]   ;;  %s637_s3 = inlined_call_operand.vmem [shape: f32[256,28], index: 3, kind: input, shape index: {}]   ;;  %s638_s0 = inlined_call_operand.vmem [shape: f32[8,28], index: 0, kind: input, shape index: {}]   ;;  %s639_s2 = inlined_call_operand.vmem [shape: f32[1,256], index: 2, kind: input, shape index: {}]   ;;  %s640_s5 = inlined_call_operand.vmem [shape: f32[28,4], index: 5, kind: input, shape index: {}]   ;;  %s641_s4 = inlined_call_operand.vmem [shape: f32[1,28], index: 4, kind: input, shape index: {}]   ;;  %s642_s6 = inlined_call_operand.vmem [shape: f32[8,4], index: 6, kind: output, shape index: {}]  }
   0x1   :  { %v25_v0 = vld [vmem:[%s636_s1 + $0x8] sm:$0xff]  ;;  %v27_v1 = vld [vmem:[%s636_s1 + $0x18] sm:$0xff]  ;;  %v24_v2 = vld [vmem:[%s636_s1] sm:$0xff]  ;;  %119 = vmatprep.mubr.f32.mxu0 %v435_v3  ;;  %v34_v63 = vlaneseq  ;;  %vm438_vm4 = vmmov 0   ;;  %vm319_vm5 = vcmask 31744  }
   0x2   :  { %v382_v4 = vpack.c.bf16 %v27_v1, %v25_v0  ;;  %v26_v5 = vld [vmem:[%s636_s1 + $0x10] sm:$0xff]  ;;  %v29_v6 = vld [vmem:[%s636_s1 + $0x28] sm:$0xff]  ;;  %v31_v7 = vld [vmem:[%s636_s1 + $0x38] sm:$0xf] }
   0x3   :  { %v384_v8 = vpack.c.bf16 %v26_v5, %v24_v2  ;;  %v386_v9 = vpack.c.bf16 %v31_v7, %v29_v6  ;;  %vm493_vm2 = vmpackc.low %vm48_vm0, %vm436_vm1  ;;  %v28_v11 = vld [vmem:[%s636_s1 + $0x20] sm:$0xff]  ;;  %v30_v12 = vld [vmem:[%s636_s1 + $0x30] sm:$0xf]  ;;  %v35_v0 = vshrl.u32 %v34_v63, 7 }
   0x4   :  { %383 = vmatprep.subr.bf16.mxu0 %v382_v4  ;;  %v144_v13 = vld [vmem:[%s637_s3 + $0x80] sm:$0xff]  ;;  %v145_v14 = vld [vmem:[%s637_s3 + $0x88] sm:$0xff]  ;;  %v389_v15 = vpack.c.bf16 %v30_v12, %v28_v11  ;;  %v146_v19 = vld [vmem:[%s637_s3 + $0x90] sm:$0xff] }
   0x5   :  { %385 = vmatpush1.bf16.msra.mxu0 %v384_v8  ;;  %v392_v16 = vpack.c.bf16 %v145_v14, %v144_v13  ;;  %v128_v17 = vld [vmem:[%s637_s3] sm:$0xff]  ;;  %v129_v18 = vld [vmem:[%s637_s3 + $0x8] sm:$0xff]  ;;  %v147_v21 = vld [vmem:[%s637_s3 + $0x98] sm:$0xff]  ;;  %v36_v1 = vsub.s32 0, %v35_v0  ;;  %v40_v4 = vsub.s32 1, %v35_v0 }
   0x6   :  { %388 = vmatprep.subr.msk.bf16.mxu0 %vm493_vm2, %v386_v9  ;;  %v394_v20 = vpack.c.bf16 %v129_v18, %v128_v17  ;;  %v130_v22 = vld [vmem:[%s637_s3 + $0x10] sm:$0xff]  ;;  %v131_v23 = vld [vmem:[%s637_s3 + $0x18] sm:$0xff]  ;;  %v396_v24 = vpack.c.bf16 %v147_v21, %v146_v19  ;;  %v148_v25 = vld [vmem:[%s637_s3 + $0xa0] sm:$0xff]  ;;  %v437_v17 = vmov 0.0|0.0  }
   0x7   :  { %393 = vmatprep.subr.bf16.mxu1 %v392_v16  ;;  %v149_v26 = vld [vmem:[%s637_s3 + $0xa8] sm:$0xff]  ;;  %v398_v27 = vpack.c.bf16 %v131_v23, %v130_v22  ;;  %v540_v28 = vld [vmem:[%s638_s0] sm:$0xff]  ;;  %v150_v32 = vld [vmem:[%s637_s3 + $0xb0] sm:$0xff] }
   0x8   :  { %395 = vmatpush3.bf16.msra.mxu1 %v394_v20  ;;  %v400_v29 = vpack.c.bf16 %v149_v26, %v148_v25  ;;  %v132_v30 = vld [vmem:[%s637_s3 + $0x20] sm:$0xff]  ;;  %v133_v31 = vld [vmem:[%s637_s3 + $0x28] sm:$0xff]  ;;  %v151_v33 = vld [vmem:[%s637_s3 + $0xb8] sm:$0xff] }
   0x9   :  { %391 = vmatpush1.bf16.msk.msra.mxu0 %vm493_vm2, %v389_v15  ;;  %397 = vmatprep.subr.bf16.mxu1 %v396_v24  ;;  %v402_v34 = vpack.c.bf16 %v133_v31, %v132_v30  ;;  %v404_v35 = vpack.c.bf16 %v151_v33, %v150_v32  ;;  %v134_v36 = vld [vmem:[%s637_s3 + $0x30] sm:$0xff]  ;;  %v135_v37 = vld [vmem:[%s637_s3 + $0x38] sm:$0xff]  ;;  %v152_v38 = vld [vmem:[%s637_s3 + $0xc0] sm:$0xff] }
   0xa   :  { %v153_v39 = vld [vmem:[%s637_s3 + $0xc8] sm:$0xff]  ;;  %v406_v40 = vpack.c.bf16 %v135_v37, %v134_v36  ;;  %v136_v42 = vld [vmem:[%s637_s3 + $0x40] sm:$0xff]  ;;  %v154_v44 = vld [vmem:[%s637_s3 + $0xd0] sm:$0xff]  ;;  %424 = vmatprep.subr.bf16.mxu0 %v437_v17 }
   0xb   :  { %v408_v41 = vpack.c.bf16 %v153_v39, %v152_v38  ;;  %v137_v43 = vld [vmem:[%s637_s3 + $0x48] sm:$0xff]  ;;  %v155_v45 = vld [vmem:[%s637_s3 + $0xd8] sm:$0xff]  ;;  %v138_v48 = vld [vmem:[%s637_s3 + $0x50] sm:$0xff] }
   0xc   :  { %327 = vmatmul.mubr.msk.f32.vlgmr.msra.gmra.mrb[0].mxu0 %vm44_vm3, %v540_v28  ;;  %399 = vmatpush3.bf16.msra.mxu1 %v398_v27  ;;  %v410_v46 = vpack.c.bf16 %v137_v43, %v136_v42  ;;  %v412_v47 = vpack.c.bf16 %v155_v45, %v154_v44  ;;  %v139_v49 = vld [vmem:[%s637_s3 + $0x58] sm:$0xff]  ;;  %v156_v50 = vld [vmem:[%s637_s3 + $0xe0] sm:$0xff]  ;;  %v157_v51 = vld [vmem:[%s637_s3 + $0xe8] sm:$0xff] }
   0xd   :  { %401 = vmatprep.subr.bf16.mxu1 %v400_v29  ;;  %v414_v52 = vpack.c.bf16 %v139_v49, %v138_v48  ;;  %v416_v53 = vpack.c.bf16 %v157_v51, %v156_v50  ;;  %v140_v54 = vld [vmem:[%s637_s3 + $0x60] sm:$0xff]  ;;  %v141_v55 = vld [vmem:[%s637_s3 + $0x68] sm:$0xff]  ;;  %v158_v57 = vld [vmem:[%s637_s3 + $0xf0] sm:$0xff]  ;;  %379 = vmatprep.mubr.msk.f32.mxu0 %vm438_vm4, %v435_v3 }
   0xe   :  { %v418_v56 = vpack.c.bf16 %v141_v55, %v140_v54  ;;  %v159_v58 = vld [vmem:[%s637_s3 + $0xf8] sm:$0xff]  ;;  %v142_v60 = vld [vmem:[%s637_s3 + $0x70] sm:$0xff]  ;;  %v32_v2 = vld [vmem:[%s639_s2] sm:$0x3] }
   0xf   :  { %v420_v59 = vpack.c.bf16 %v159_v58, %v158_v57  ;;  %v143_v61 = vld [vmem:[%s637_s3 + $0x78] sm:$0xff]  ;;  %v37_v5 = vrot.slane %v32_v2, %v36_v1  ;;  %v41_v6 = vrot.slane %v32_v2, %v40_v4  ;;  %v239_v14 = vld [vmem:[%s640_s5] sm:$0xff]  ;;  %v240_v15 = vld [vmem:[%s640_s5 + $0x8] sm:$0xff] }
  0x10   :  { %403 = vmatpush3.bf16.msra.mxu1 %v402_v34  ;;  %v422_v62 = vpack.c.bf16 %v143_v61, %v142_v60  ;;  %v425_v16 = vpack.c.bf16 %v240_v15, %v239_v14  ;;  %v241_v18 = vld [vmem:[%s640_s5 + $0x10] sm:$0xff]  ;;  %v242_v19 = vld [vmem:[%s640_s5 + $0x18] sm:$0xf]  ;;  %v328_v22 = vld [vmem:[%s641_s4] ss:$0 sm:$0xff] }
  0x11   :  { %405 = vmatprep.subr.bf16.mxu1 %v404_v35  ;;  %v428_v20 = vpack.c.bf16 %v242_v19, %v241_v18 }
  0x12   :  { %426 = vmatpush3.bf16.msra.mxu0 %v425_v16 }
  0x13   :  { %427 = vmatprep.subr.bf16.mxu0 %v437_v17 }
  0x14   :  { %407 = vmatpush3.bf16.msra.mxu1 %v406_v40 }
  0x15   :  { %409 = vmatprep.subr.bf16.mxu1 %v408_v41 }
  0x16   :  { %430 = vmatpush3.bf16.msk.msra.mxu0 %vm493_vm2, %v428_v20 }
  0x18   :  { %411 = vmatpush3.bf16.msra.mxu1 %v410_v46 }
  0x19   :  { %413 = vmatprep.subr.bf16.mxu1 %v412_v47 }
  0x1c   :  { %415 = vmatpush3.bf16.msra.mxu1 %v414_v52 }
  0x1d   :  { %417 = vmatprep.subr.bf16.mxu1 %v416_v53 }
  0x20   :  { %419 = vmatpush3.bf16.msra.mxu1 %v418_v56 }
  0x21   :  { %421 = vmatprep.subr.bf16.mxu1 %v420_v59 }
  0x24   :  { %423 = vmatpush3.bf16.msra.mxu1 %v422_v62 }
  0xdf   :  { %v121_v7 = vpop.f32.mrb[0].mxu0 }
  0xe0   :  { %v122_v8 = vadd.f32 %v121_v7, %v37_v5  ;;  %v123_v9 = vpop.f32.mrb[1].mxu0 }
  0xe1   :  { %v124_v11 = vadd.f32 %v123_v9, %v41_v6 }
  0xe2   :  { %v126_v13 = vmax.f32 %v122_v8, 0.0 }
  0xe3   :  { %v127_v12 = vmax.f32 %v124_v11, 0.0 }
  0xe5   :  { %231 = vmatprep.mubr.f32.mxu1 %v127_v12 }
  0xe6   :  { %232 = vmatmul.mubr.f32.vlgmr.msra.gmra.mrb[0].mxu1 %v126_v13 }
 0x1b9   :  { %v363_v21 = vpop.f32.mrb[0].mxu1 }
 0x1ba   :  { %v364_v23 = vpop.f32.mrb[1].mxu1 }
 0x1bb   :  { %v365_v24 = vadd.f32 %v364_v23, %v363_v21 }
 0x1bd   :  { %v234_v25 = vadd.f32 %v365_v24, %v328_v22 }
 0x1bf   :  { %v237_v26 = vand.u32 2147483647, %v234_v25 }
 0x1c1   :  { %v238_v27 = vmul.f32 %v237_v26, %v540_v28 }
 0x1c3   :  { %380 = vmatmul.mubr.msk.f32.vlgmr.msra.gmra.mrb[2].mxu0 %vm44_vm3, %v238_v27 }
 0x296   :  { %v315_v29 = vpop.f32.mrb[2].mxu0 }
 0x297   :  { %v316_v10 = vadd.f32 %v315_v29, %v237_v26  ;;  %v381_v30 = vpop.f32.mrb[3].mxu0 }
 0x299   :  { %320 = vst.msk [vmem:[%s642_s6] sm:$0xff] %vm319_vm5, %v316_v10 }

</bundles_post_ra>
